<compile_context>
chip_gen: v5e
topology: v5e:2x2
jax: 0.10.0
libtpu: 0.0.40
codegen_flags: <defaults>
</compile_context>

<pallas_src>
import functools

import jax
import jax.numpy as jnp
from jax.experimental import pallas as pl
from jax.experimental.pallas import tpu as pltpu

BN_EPS = 1e-5
_MIB = 1 << 20


def _mm(a, b):
    """Standard (m,k)@(k,n) matmul with f32 accumulation on the MXU."""
    return jax.lax.dot_general(
        a, b, (((1,), (0,)), ((), ())), preferred_element_type=jnp.float32)


def _mm_t(a, b):
    """(m,k) x (n,k) -> (m,n): contract the last dims, f32 accumulation."""
    return jax.lax.dot_general(
        a, b, (((1,), (1,)), ((), ())), preferred_element_type=jnp.float32)


# ----------------------------------------------------------------- pass 1: KV
def _kv_kernel(x_ref, w_phi_ref, b_phi_ref, w_g_ref, b_g_ref, phi_ref, g_ref):
    # x_ref : (1, 4, TM, C)  pool-member-major slab (4 members per 2x2 window)
    # w_phi, w_g : (Ci, C);  b_phi : (1, Ci);  b_g : (Ci, 1)
    # phi_ref: (1, TM, Ci)   pooled keys,   spatial-major
    # g_ref  : (1, Ci, TM)   pooled values, channel-major
    def proj_phi(m):                       # (TM, Ci)
        return _mm_t(x_ref[0, m], w_phi_ref[...])

    def proj_g(m):                         # (Ci, TM)
        return _mm_t(w_g_ref[...], x_ref[0, m])

    # MaxPool3d(1,2,2) == max over the 4 window members (1x1 conv is
    # pointwise); bias added after the max (max(a+b, c+b) == max(a, c) + b).
    phi = jnp.maximum(jnp.maximum(proj_phi(0), proj_phi(1)),
                      jnp.maximum(proj_phi(2), proj_phi(3))) + b_phi_ref[...]
    g = jnp.maximum(jnp.maximum(proj_g(0), proj_g(1)),
                    jnp.maximum(proj_g(2), proj_g(3))) + b_g_ref[...]
    phi_ref[0] = phi.astype(phi_ref.dtype)
    g_ref[0] = g.astype(g_ref.dtype)


# ---------------------------------------------------------- pass 2: attention
def _attn_kernel(x_ref, phi_ref, g_ref, w_theta_ref, b_theta_ref, w_w_ref,
                 scale_ref, shift_ref, out_ref,
                 theta_sc, m_sc, l_sc, acc_sc, *, mm_dtype):
    # x_ref   : (1, C, TQ)  query tile, native channel-first layout
    # phi_ref : (1, TK, Ci) key block   (mm_dtype)
    # g_ref   : (1, Ci, TK) value block (mm_dtype)
    # out_ref : (1, C, TQ)
    # scratch : theta (Ci, TQ) mm_dtype; m/l (1, TQ) f32; acc (Ci, TQ) f32
    kk = pl.program_id(2)

    @pl.when(kk == 0)
    def _init():
        th = _mm(w_theta_ref[...], x_ref[0]) + b_theta_ref[...]  # (Ci, TQ) f32
        theta_sc[...] = th.astype(theta_sc.dtype)
        m_sc[...] = jnp.full(m_sc.shape, -jnp.inf, jnp.float32)
        l_sc[...] = jnp.zeros(l_sc.shape, jnp.float32)
        acc_sc[...] = jnp.zeros(acc_sc.shape, jnp.float32)

    # Scores for this key block: (TK, TQ); online softmax over the key axis
    # (axis 0) with f32 statistics.
    f = _mm(phi_ref[0], theta_sc[...])                            # (TK, TQ) f32
    m_prev = m_sc[...]
    m_new = jnp.maximum(m_prev, jnp.max(f, axis=0, keepdims=True))
    alpha = jnp.exp(m_prev - m_new)                               # (1, TQ)
    if mm_dtype == jnp.float32:
        p = jnp.exp(f - m_new)
        psum = jnp.sum(p, axis=0, keepdims=True)
    else:
        # bf16 exp halves the (TK, TQ) footprint and feeds the MXU directly;
        # chips without a bf16 EUP lower it via f32 internally.
        p = jnp.exp((f - m_new).astype(mm_dtype))
        psum = jnp.sum(p.astype(jnp.float32), axis=0, keepdims=True)
    l_sc[...] = alpha * l_sc[...] + psum
    acc_sc[...] = alpha * acc_sc[...] + _mm(g_ref[0], p)          # (Ci, TQ) f32
    m_sc[...] = m_new

    @pl.when(kk == pl.num_programs(2) - 1)
    def _finalize():
        inv = pl.reciprocal(l_sc[...], approx=mm_dtype != jnp.float32)
        y = acc_sc[...] * inv                                     # (Ci, TQ) f32
        # W (1x1 conv back to C) + fused inference-BN affine + residual.
        w_y = _mm(w_w_ref[...], y) * scale_ref[...] + shift_ref[...]
        out_ref[0] = (w_y + x_ref[0]).astype(out_ref.dtype)


# ------------------------------------------------------------------- wrapper
def _pick_tile(total, cap):
    """Largest tile <= cap that is the full extent or a multiple of 128 that
    divides the extent (keeps every BlockSpec dim full or (8,128)-aligned)."""
    if total <= cap:
        return total
    t = (cap // 128) * 128
    while t >= 128:
        if total % t == 0:
            return t
        t -= 128
    return total


def _attn_vmem_bytes(tq, tk, C, Ci, mm_b):
    bufs = 2 * C * tq * 4                    # x (double buffered)
    bufs += 2 * C * tq * 4                   # out
    bufs += 2 * 2 * Ci * tk * mm_b           # phi + g blocks
    bufs += 2 * 2 * Ci * C * 4               # w_theta + w_w (double buffered)
    scratch = Ci * tq * (mm_b + 4) + 2 * tq * 4
    interm = tk * tq * (8 + mm_b)            # f (f32), p, headroom
    return bufs + scratch + interm


def _choose_attn_tiles(N, M, C, Ci, mm_b, budget=28 * _MIB):
    cq, ck = 512, 512
    while True:
        tq, tk = _pick_tile(N, cq), _pick_tile(M, ck)
        if _attn_vmem_bytes(tq, tk, C, Ci, mm_b) <= budget:
            return tq, tk
        if ck > 128:
            ck //= 2
        elif cq > 128:
            cq //= 2
        else:
            return tq, tk


def nonlocal_block(x, params, *, tq=None, tk=None, tm=None, use_bf16=True):
    """x: (B, C, T, H, W) float32 (PyTorch NCTHW layout)."""
    B, C, T, H, W = x.shape
    assert H % 2 == 0 and W % 2 == 0, "sub_sample pool needs even H, W"
    Ci = params["w_theta"].shape[0]
    N = T * H * W
    M = N // 4

    mm_dtype = jnp.bfloat16 if use_bf16 else jnp.float32
    mm_b = 2 if use_bf16 else 4

    # ------------- tile selection from an explicit VMEM budget -------------
    if tq is None or tk is None:
        d_tq, d_tk = _choose_attn_tiles(N, M, C, Ci, mm_b)
        tq = d_tq if tq is None else tq
        tk = d_tk if tk is None else tk
    if tm is None:
        cap = 512
        while cap > 128 and 2 * 4 * cap * C * 4 > 12 * _MIB:
            cap //= 2
        tm = _pick_tile(M, cap)

    def _ok(tile, total):
        return total % tile == 0 and (tile == total or tile % 128 == 0)
    assert _ok(tq, N) and _ok(tk, M) and _ok(tm, M), (tq, tk, tm, N, M)

    # ------------------- host-side parameter fusion ------------------------
    # Inference BatchNorm folded into a per-channel scale/shift; the W conv
    # bias b_w is folded into the shift.
    # TODO(synk): training-mode BN (batch statistics over B*N) would need a
    # cross-grid reduction; not implemented.
    scale = params["gamma"] * jax.lax.rsqrt(params["running_var"] + BN_EPS)
    shift = params["beta"] + (params["b_w"] - params["running_mean"]) * scale
    scale = scale.reshape(C, 1)
    shift = shift.reshape(C, 1)
    b_theta = params["b_theta"].reshape(Ci, 1)
    b_phi = params["b_phi"].reshape(1, Ci)
    b_g = params["b_g"].reshape(Ci, 1)
    # TODO(synk): pad Ci up to 256 (zero weight columns) to fill the v6e/v7x
    # MXU for small inter_channels deployments.

    # -------------- pass 1 input: pool-member-major gather -----------------
    # The ONLY remaining relayout: a single gather-copy of x for the KV pass,
    # so MaxPool(1,2,2) becomes a max over 4 slab slices.  The query/output
    # path below runs in the native (B, C, N) layout with zero relayout.
    # TODO(synk): express this grouping with in-kernel strided slices to drop
    # the last host-side copy as well.
    x4 = jnp.transpose(x.reshape(B, C, T, H // 2, 2, W // 2, 2),
                       (0, 4, 6, 2, 3, 5, 1)).reshape(B, 4, M, C)
    x4 = x4.astype(jnp.float32)

    def w_spec(a):
        nd = a.ndim
        return pl.BlockSpec(a.shape, lambda *args, _n=nd: (0,) * _n)

    est1 = (2 * 4 * tm * C * 4 + 2 * 2 * Ci * tm * mm_b + 4 * Ci * C * 4
            + 10 * tm * max(C, Ci) * 4)
    kv_cost = pl.CostEstimate(
        flops=4 * B * N * C * Ci,
        transcendentals=0,
        bytes_accessed=B * N * C * 4 + 2 * B * M * Ci * mm_b + 4 * Ci * C * 4)

    phi, g = pl.pallas_call(
        _kv_kernel,
        out_shape=(jax.ShapeDtypeStruct((B, M, Ci), mm_dtype),
                   jax.ShapeDtypeStruct((B, Ci, M), mm_dtype)),
        grid=(B, M // tm),
        in_specs=[pl.BlockSpec((1, 4, tm, C), lambda b, i: (b, 0, i, 0)),
                  w_spec(params["w_phi"]), w_spec(b_phi),
                  w_spec(params["w_g"]), w_spec(b_g)],
        out_specs=(pl.BlockSpec((1, tm, Ci), lambda b, i: (b, i, 0)),
                   pl.BlockSpec((1, Ci, tm), lambda b, i: (b, 0, i))),
        compiler_params=pltpu.CompilerParams(
            dimension_semantics=("parallel", "parallel"),
            vmem_limit_bytes=int(max(32 * _MIB, min(2 * est1, 56 * _MIB)))),
        cost_estimate=kv_cost,
    )(x4, params["w_phi"], b_phi, params["w_g"], b_g)

    # --------- pass 2: flash-style attention in native (B, C, N) -----------
    x2 = x.reshape(B, C, N).astype(jnp.float32)        # free reshape, no copy
    est2 = _attn_vmem_bytes(tq, tk, C, Ci, mm_b)
    attn_cost = pl.CostEstimate(
        flops=4 * B * N * Ci * (C + M),
        transcendentals=B * N * M,
        bytes_accessed=(2 * B * N * C * 4
                        + B * (N // tq) * 2 * M * Ci * mm_b
                        + 4 * Ci * C * 4))
    # TODO(synk): optionally stream x / out in bf16 to halve pass-2 HBM bytes
    # when the surrounding model tolerates a bf16 activation interface.

    out = pl.pallas_call(
        functools.partial(_attn_kernel, mm_dtype=mm_dtype),
        out_shape=jax.ShapeDtypeStruct((B, C, N), jnp.float32),
        grid=(B, N // tq, M // tk),
        in_specs=[pl.BlockSpec((1, C, tq), lambda b, q, k: (b, 0, q)),
                  pl.BlockSpec((1, tk, Ci), lambda b, q, k: (b, k, 0)),
                  pl.BlockSpec((1, Ci, tk), lambda b, q, k: (b, 0, k)),
                  w_spec(params["w_theta"]), w_spec(b_theta),
                  w_spec(params["w_w"]), w_spec(scale), w_spec(shift)],
        out_specs=pl.BlockSpec((1, C, tq), lambda b, q, k: (b, 0, q)),
        scratch_shapes=[pltpu.VMEM((Ci, tq), mm_dtype),    # theta
                        pltpu.VMEM((1, tq), jnp.float32),  # running max
                        pltpu.VMEM((1, tq), jnp.float32),  # running sum
                        pltpu.VMEM((Ci, tq), jnp.float32)],  # y accumulator
        compiler_params=pltpu.CompilerParams(
            dimension_semantics=("parallel", "parallel", "arbitrary"),
            vmem_limit_bytes=int(max(32 * _MIB, min(2 * est2, 56 * _MIB)))),
        cost_estimate=attn_cost,
    )(x2, phi, g, params["w_theta"], b_theta, params["w_w"], scale, shift)

    return out.reshape(B, C, T, H, W)


# ------------------------------------------------------------------ reference
def reference(x, params):
    """Pure-JAX f32 transcription of the PyTorch forward (eval-mode BN)."""
    B, C, T, H, W = x.shape
    Ci = params["w_theta"].shape[0]
    hi = jax.lax.Precision.HIGHEST

    def conv(v, w, b):
        return (jnp.einsum('bcthw,oc->bothw', v, w, precision=hi)
                + b[None, :, None, None, None])

    def pool(v):  # MaxPool3d(kernel=(1,2,2))
        b, c, t, h, w = v.shape
        return v.reshape(b, c, t, h // 2, 2, w // 2, 2).max(axis=(4, 6))

    g_x = pool(conv(x, params["w_g"], params["b_g"])).reshape(B, Ci, -1)
    g_x = jnp.transpose(g_x, (0, 2, 1))
    theta_x = conv(x, params["w_theta"], params["b_theta"]).reshape(B, Ci, -1)
    theta_x = jnp.transpose(theta_x, (0, 2, 1))
    phi_x = pool(conv(x, params["w_phi"], params["b_phi"])).reshape(B, Ci, -1)
    f = jnp.einsum('bnc,bcm->bnm', theta_x, phi_x, precision=hi)
    f_div_c = jax.nn.softmax(f, axis=-1)
    y = jnp.einsum('bnm,bmc->bnc', f_div_c, g_x, precision=hi)
    y = jnp.transpose(y, (0, 2, 1)).reshape(B, Ci, T, H, W)
    w_y = conv(y, params["w_w"], params["b_w"])
    inv = 1.0 / jnp.sqrt(params["running_var"] + BN_EPS)
    bcast = lambda v: v[None, :, None, None, None]
    w_y = (w_y - bcast(params["running_mean"])) * bcast(inv) \
          * bcast(params["gamma"]) + bcast(params["beta"])
    return w_y + x


if __name__ == "__main__":
    # Small shapes: in_channels=16 -> inter_channels=8, x: (2, 16, 2, 32, 32)
    # (N = 2048 queries, M = 512 pooled keys -> exercises multi-q and multi-k
    #  grid steps of the flash-style pass 2 and the M tiling of pass 1).
    B, C, T, H, W = 2, 16, 2, 32, 32
    Ci = C // 2

    key = jax.random.PRNGKey(0)
    ks = jax.random.split(key, 16)
    params = {
        "w_theta": 0.2 * jax.random.normal(ks[0], (Ci, C), jnp.float32),
        "b_theta": 0.1 * jax.random.normal(ks[1], (Ci,), jnp.float32),
        "w_phi":   0.2 * jax.random.normal(ks[2], (Ci, C), jnp.float32),
        "b_phi":   0.1 * jax.random.normal(ks[3], (Ci,), jnp.float32),
        "w_g":     0.2 * jax.random.normal(ks[4], (Ci, C), jnp.float32),
        "b_g":     0.1 * jax.random.normal(ks[5], (Ci,), jnp.float32),
        "w_w":     0.2 * jax.random.normal(ks[6], (C, Ci), jnp.float32),
        "b_w":     0.1 * jax.random.normal(ks[7], (C,), jnp.float32),
        "gamma":   1.0 + 0.1 * jax.random.normal(ks[8], (C,), jnp.float32),
        "beta":    0.1 * jax.random.normal(ks[9], (C,), jnp.float32),
        "running_mean": 0.1 * jax.random.normal(ks[10], (C,), jnp.float32),
        "running_var":  0.5 + jax.random.uniform(ks[11], (C,), jnp.float32),
    }
    x = jax.random.normal(ks[12], (B, C, T, H, W), jnp.float32)

    z_ref = jax.block_until_ready(reference(x, params))

    # f32 MXU path (exact math, exact reciprocal) -> tight check.
    z32 = jax.block_until_ready(
        nonlocal_block(x, params, tk=256, tm=128, use_bf16=False))
    assert z32.shape == (B, C, T, H, W)
    assert jnp.allclose(z32, z_ref, rtol=1e-3, atol=1e-3), \
        f"f32 path max abs err {jnp.max(jnp.abs(z32 - z_ref))}"

    # bf16 MXU path (perf config) -> bf16-rounding tolerance.
    zbf = jax.block_until_ready(
        nonlocal_block(x, params, tk=256, tm=128, use_bf16=True))
    assert zbf.shape == (B, C, T, H, W)
    assert jnp.allclose(zbf, z_ref, rtol=5e-2, atol=5e-2), \
        f"bf16 path max abs err {jnp.max(jnp.abs(zbf - z_ref))}"

    print("KERNEL_OK")
</pallas_src>

<mosaic_0001>
module attributes {stable_mosaic.version = 11 : i64} {
  func.func @_kv_kernel(%arg0: i32, %arg1: i32, %arg2: memref<1x4x128x16xf32, #tpu.memory_space<vmem>>, %arg3: memref<8x16xf32, #tpu.memory_space<vmem>>, %arg4: memref<1x8xf32, #tpu.memory_space<vmem>>, %arg5: memref<8x16xf32, #tpu.memory_space<vmem>>, %arg6: memref<8x1xf32, #tpu.memory_space<vmem>>, %arg7: memref<1x128x8xf32, #tpu.memory_space<vmem>>, %arg8: memref<1x8x128xf32, #tpu.memory_space<vmem>>) attributes {dimension_semantics = [#tpu.dimension_semantics<parallel>, #tpu.dimension_semantics<parallel>], iteration_bounds = array<i64: 2, 4>, scalar_prefetch = 0 : i64, scratch_operands = 0 : i64, tpu.core_type = #tpu.core_type<tc>, window_params = [{transform_indices = @transform_0, window_bounds = array<i64: 1, 4, 128, 16>}, {pipeline_mode = #tpu.pipeline_mode<synchronous>, transform_indices = @transform_1, window_bounds = array<i64: 8, 16>}, {pipeline_mode = #tpu.pipeline_mode<synchronous>, transform_indices = @transform_2, window_bounds = array<i64: 1, 8>}, {pipeline_mode = #tpu.pipeline_mode<synchronous>, transform_indices = @transform_3, window_bounds = array<i64: 8, 16>}, {pipeline_mode = #tpu.pipeline_mode<synchronous>, transform_indices = @transform_4, window_bounds = array<i64: 8, 1>}, {transform_indices = @transform_5, window_bounds = array<i64: 1, 128, 8>}, {transform_indices = @transform_6, window_bounds = array<i64: 1, 8, 128>}]} {
    %c0 = arith.constant 0 : index
    %c0_0 = arith.constant 0 : index
    %c0_1 = arith.constant 0 : index
    %c0_2 = arith.constant 0 : index
    %0 = vector.load %arg2[%c0, %c0_0, %c0_1, %c0_2] : memref<1x4x128x16xf32, #tpu.memory_space<vmem>>, vector<1x1x128x16xf32>
    %1 = vector.shape_cast %0 : vector<1x1x128x16xf32> to vector<128x16xf32>
    %c0_3 = arith.constant 0 : index
    %c0_4 = arith.constant 0 : index
    %2 = vector.load %arg3[%c0_3, %c0_4] : memref<8x16xf32, #tpu.memory_space<vmem>>, vector<8x16xf32>
    %cst = arith.constant dense<0.000000e+00> : vector<128x8xf32>
    %3 = tpu.matmul %1, %2, %cst {dimension_numbers = #tpu.dot_dimension_numbers<[1], [1], [0], [0], [0, 0, 1, 0], [], []>} : vector<128x16xf32>, vector<8x16xf32>, vector<128x8xf32> -> vector<128x8xf32>
    %c0_5 = arith.constant 0 : index
    %c1 = arith.constant 1 : index
    %c0_6 = arith.constant 0 : index
    %c0_7 = arith.constant 0 : index
    %4 = vector.load %arg2[%c0_5, %c1, %c0_6, %c0_7] : memref<1x4x128x16xf32, #tpu.memory_space<vmem>>, vector<1x1x128x16xf32>
    %5 = vector.shape_cast %4 : vector<1x1x128x16xf32> to vector<128x16xf32>
    %c0_8 = arith.constant 0 : index
    %c0_9 = arith.constant 0 : index
    %6 = vector.load %arg3[%c0_8, %c0_9] : memref<8x16xf32, #tpu.memory_space<vmem>>, vector<8x16xf32>
    %cst_10 = arith.constant dense<0.000000e+00> : vector<128x8xf32>
    %7 = tpu.matmul %5, %6, %cst_10 {dimension_numbers = #tpu.dot_dimension_numbers<[1], [1], [0], [0], [0, 0, 1, 0], [], []>} : vector<128x16xf32>, vector<8x16xf32>, vector<128x8xf32> -> vector<128x8xf32>
    %8 = arith.maximumf %3, %7 : vector<128x8xf32>
    %c0_11 = arith.constant 0 : index
    %c2 = arith.constant 2 : index
    %c0_12 = arith.constant 0 : index
    %c0_13 = arith.constant 0 : index
    %9 = vector.load %arg2[%c0_11, %c2, %c0_12, %c0_13] : memref<1x4x128x16xf32, #tpu.memory_space<vmem>>, vector<1x1x128x16xf32>
    %10 = vector.shape_cast %9 : vector<1x1x128x16xf32> to vector<128x16xf32>
    %c0_14 = arith.constant 0 : index
    %c0_15 = arith.constant 0 : index
    %11 = vector.load %arg3[%c0_14, %c0_15] : memref<8x16xf32, #tpu.memory_space<vmem>>, vector<8x16xf32>
    %cst_16 = arith.constant dense<0.000000e+00> : vector<128x8xf32>
    %12 = tpu.matmul %10, %11, %cst_16 {dimension_numbers = #tpu.dot_dimension_numbers<[1], [1], [0], [0], [0, 0, 1, 0], [], []>} : vector<128x16xf32>, vector<8x16xf32>, vector<128x8xf32> -> vector<128x8xf32>
    %c0_17 = arith.constant 0 : index
    %c3 = arith.constant 3 : index
    %c0_18 = arith.constant 0 : index
    %c0_19 = arith.constant 0 : index
    %13 = vector.load %arg2[%c0_17, %c3, %c0_18, %c0_19] : memref<1x4x128x16xf32, #tpu.memory_space<vmem>>, vector<1x1x128x16xf32>
    %14 = vector.shape_cast %13 : vector<1x1x128x16xf32> to vector<128x16xf32>
    %c0_20 = arith.constant 0 : index
    %c0_21 = arith.constant 0 : index
    %15 = vector.load %arg3[%c0_20, %c0_21] : memref<8x16xf32, #tpu.memory_space<vmem>>, vector<8x16xf32>
    %cst_22 = arith.constant dense<0.000000e+00> : vector<128x8xf32>
    %16 = tpu.matmul %14, %15, %cst_22 {dimension_numbers = #tpu.dot_dimension_numbers<[1], [1], [0], [0], [0, 0, 1, 0], [], []>} : vector<128x16xf32>, vector<8x16xf32>, vector<128x8xf32> -> vector<128x8xf32>
    %17 = arith.maximumf %12, %16 : vector<128x8xf32>
    %18 = arith.maximumf %8, %17 : vector<128x8xf32>
    %c0_23 = arith.constant 0 : index
    %c0_24 = arith.constant 0 : index
    %19 = vector.load %arg4[%c0_23, %c0_24] : memref<1x8xf32, #tpu.memory_space<vmem>>, vector<1x8xf32>
    %20 = vector.broadcast %19 : vector<1x8xf32> to vector<128x8xf32>
    %21 = arith.addf %18, %20 : vector<128x8xf32>
    %c0_25 = arith.constant 0 : index
    %c0_26 = arith.constant 0 : index
    %22 = vector.load %arg5[%c0_25, %c0_26] : memref<8x16xf32, #tpu.memory_space<vmem>>, vector<8x16xf32>
    %c0_27 = arith.constant 0 : index
    %c0_28 = arith.constant 0 : index
    %c0_29 = arith.constant 0 : index
    %c0_30 = arith.constant 0 : index
    %23 = vector.load %arg2[%c0_27, %c0_28, %c0_29, %c0_30] : memref<1x4x128x16xf32, #tpu.memory_space<vmem>>, vector<1x1x128x16xf32>
    %24 = vector.shape_cast %23 : vector<1x1x128x16xf32> to vector<128x16xf32>
    %cst_31 = arith.constant dense<0.000000e+00> : vector<8x128xf32>
    %25 = tpu.matmul %22, %24, %cst_31 {dimension_numbers = #tpu.dot_dimension_numbers<[1], [1], [0], [0], [0, 0, 1, 0], [], []>} : vector<8x16xf32>, vector<128x16xf32>, vector<8x128xf32> -> vector<8x128xf32>
    %c0_32 = arith.constant 0 : index
    %c0_33 = arith.constant 0 : index
    %26 = vector.load %arg5[%c0_32, %c0_33] : memref<8x16xf32, #tpu.memory_space<vmem>>, vector<8x16xf32>
    %c0_34 = arith.constant 0 : index
    %c1_35 = arith.constant 1 : index
    %c0_36 = arith.constant 0 : index
    %c0_37 = arith.constant 0 : index
    %27 = vector.load %arg2[%c0_34, %c1_35, %c0_36, %c0_37] : memref<1x4x128x16xf32, #tpu.memory_space<vmem>>, vector<1x1x128x16xf32>
    %28 = vector.shape_cast %27 : vector<1x1x128x16xf32> to vector<128x16xf32>
    %cst_38 = arith.constant dense<0.000000e+00> : vector<8x128xf32>
    %29 = tpu.matmul %26, %28, %cst_38 {dimension_numbers = #tpu.dot_dimension_numbers<[1], [1], [0], [0], [0, 0, 1, 0], [], []>} : vector<8x16xf32>, vector<128x16xf32>, vector<8x128xf32> -> vector<8x128xf32>
    %30 = arith.maximumf %25, %29 : vector<8x128xf32>
    %c0_39 = arith.constant 0 : index
    %c0_40 = arith.constant 0 : index
    %31 = vector.load %arg5[%c0_39, %c0_40] : memref<8x16xf32, #tpu.memory_space<vmem>>, vector<8x16xf32>
    %c0_41 = arith.constant 0 : index
    %c2_42 = arith.constant 2 : index
    %c0_43 = arith.constant 0 : index
    %c0_44 = arith.constant 0 : index
    %32 = vector.load %arg2[%c0_41, %c2_42, %c0_43, %c0_44] : memref<1x4x128x16xf32, #tpu.memory_space<vmem>>, vector<1x1x128x16xf32>
    %33 = vector.shape_cast %32 : vector<1x1x128x16xf32> to vector<128x16xf32>
    %cst_45 = arith.constant dense<0.000000e+00> : vector<8x128xf32>
    %34 = tpu.matmul %31, %33, %cst_45 {dimension_numbers = #tpu.dot_dimension_numbers<[1], [1], [0], [0], [0, 0, 1, 0], [], []>} : vector<8x16xf32>, vector<128x16xf32>, vector<8x128xf32> -> vector<8x128xf32>
    %c0_46 = arith.constant 0 : index
    %c0_47 = arith.constant 0 : index
    %35 = vector.load %arg5[%c0_46, %c0_47] : memref<8x16xf32, #tpu.memory_space<vmem>>, vector<8x16xf32>
    %c0_48 = arith.constant 0 : index
    %c3_49 = arith.constant 3 : index
    %c0_50 = arith.constant 0 : index
    %c0_51 = arith.constant 0 : index
    %36 = vector.load %arg2[%c0_48, %c3_49, %c0_50, %c0_51] : memref<1x4x128x16xf32, #tpu.memory_space<vmem>>, vector<1x1x128x16xf32>
    %37 = vector.shape_cast %36 : vector<1x1x128x16xf32> to vector<128x16xf32>
    %cst_52 = arith.constant dense<0.000000e+00> : vector<8x128xf32>
    %38 = tpu.matmul %35, %37, %cst_52 {dimension_numbers = #tpu.dot_dimension_numbers<[1], [1], [0], [0], [0, 0, 1, 0], [], []>} : vector<8x16xf32>, vector<128x16xf32>, vector<8x128xf32> -> vector<8x128xf32>
    %39 = arith.maximumf %34, %38 : vector<8x128xf32>
    %40 = arith.maximumf %30, %39 : vector<8x128xf32>
    %c0_53 = arith.constant 0 : index
    %c0_54 = arith.constant 0 : index
    %41 = vector.load %arg6[%c0_53, %c0_54] : memref<8x1xf32, #tpu.memory_space<vmem>>, vector<8x1xf32>
    %42 = vector.broadcast %41 : vector<8x1xf32> to vector<8x128xf32>
    %43 = arith.addf %40, %42 : vector<8x128xf32>
    %c0_55 = arith.constant 0 : index
    %c0_56 = arith.constant 0 : index
    %c0_57 = arith.constant 0 : index
    %44 = vector.load %arg7[%c0_55, %c0_56, %c0_57] : memref<1x128x8xf32, #tpu.memory_space<vmem>>, vector<1x128x8xf32>
    %45 = vector.shape_cast %44 : vector<1x128x8xf32> to vector<128x8xf32>
    %46 = vector.shape_cast %21 : vector<128x8xf32> to vector<1x128x8xf32>
    tpu.vector_store %arg7[%c0_55, %c0_56, %c0_57], %46 {strides = array<i32>} : memref<1x128x8xf32, #tpu.memory_space<vmem>>, vector<1x128x8xf32>,
    %c0_58 = arith.constant 0 : index
    %c0_59 = arith.constant 0 : index
    %c0_60 = arith.constant 0 : index
    %47 = vector.load %arg8[%c0_58, %c0_59, %c0_60] : memref<1x8x128xf32, #tpu.memory_space<vmem>>, vector<1x8x128xf32>
    %48 = vector.shape_cast %47 : vector<1x8x128xf32> to vector<8x128xf32>
    %49 = vector.shape_cast %43 : vector<8x128xf32> to vector<1x8x128xf32>
    tpu.vector_store %arg8[%c0_58, %c0_59, %c0_60], %49 {strides = array<i32>} : memref<1x8x128xf32, #tpu.memory_space<vmem>>, vector<1x8x128xf32>,
    return
  }
  func.func @transform_0(%arg0: i32, %arg1: i32) -> (i32, i32, i32, i32) {
    %c0_i32 = arith.constant 0 : i32
    %c0_i32_0 = arith.constant 0 : i32
    %c0_i32_1 = arith.constant 0 : i32
    return %arg0, %c0_i32, %arg1, %c0_i32_0 : i32, i32, i32, i32
  }
  func.func @transform_1(%arg0: i32, %arg1: i32) -> (i32, i32) {
    %c0_i32 = arith.constant 0 : i32
    %c0_i32_0 = arith.constant 0 : i32
    %c0_i32_1 = arith.constant 0 : i32
    return %c0_i32, %c0_i32_0 : i32, i32
  }
  func.func @transform_2(%arg0: i32, %arg1: i32) -> (i32, i32) {
    %c0_i32 = arith.constant 0 : i32
    %c0_i32_0 = arith.constant 0 : i32
    %c0_i32_1 = arith.constant 0 : i32
    return %c0_i32, %c0_i32_0 : i32, i32
  }
  func.func @transform_3(%arg0: i32, %arg1: i32) -> (i32, i32) {
    %c0_i32 = arith.constant 0 : i32
    %c0_i32_0 = arith.constant 0 : i32
    %c0_i32_1 = arith.constant 0 : i32
    return %c0_i32, %c0_i32_0 : i32, i32
  }
  func.func @transform_4(%arg0: i32, %arg1: i32) -> (i32, i32) {
    %c0_i32 = arith.constant 0 : i32
    %c0_i32_0 = arith.constant 0 : i32
    %c0_i32_1 = arith.constant 0 : i32
    return %c0_i32, %c0_i32_0 : i32, i32
  }
  func.func @transform_5(%arg0: i32, %arg1: i32) -> (i32, i32, i32) {
    %c0_i32 = arith.constant 0 : i32
    %c0_i32_0 = arith.constant 0 : i32
    return %arg0, %arg1, %c0_i32 : i32, i32, i32
  }
  func.func @transform_6(%arg0: i32, %arg1: i32) -> (i32, i32, i32) {
    %c0_i32 = arith.constant 0 : i32
    %c0_i32_0 = arith.constant 0 : i32
    return %arg0, %c0_i32, %arg1 : i32, i32, i32
  }
}

</mosaic_0001>

<bundles_post_ra>
// kernel: tpu_custom_call.1
= control target key start
LH: loop header
LB: loop body
LE: loop exit
PB: predicated region body
PF: predicated region fallthrough
CT: control target
= control target key end

     0   :  { %12 = vsyncpa [#allocation4], 0  ;;  %s2573_s0 = inlined_call_operand.vmem [shape: f32[2,4,512,16], index: 0, kind: input, shape index: {}]   ;;  %s2574_s1 = inlined_call_operand.vmem [shape: f32[8,16], index: 1, kind: input, shape index: {}]   ;;  %s2575_s2 = inlined_call_operand.vmem [shape: f32[1,8], index: 2, kind: input, shape index: {}]   ;;  %s2576_s3 = inlined_call_operand.vmem [shape: f32[8,16], index: 3, kind: input, shape index: {}]   ;;  %s2577_s4 = inlined_call_operand.vmem [shape: f32[8,1], index: 4, kind: input, shape index: {}]   ;;  %s2578_s5 = inlined_call_operand.vmem [shape: f32[2,512,8], index: 5, kind: output, shape index: {0}]   ;;  %s2579_s6 = inlined_call_operand.hbm [shape: f32[2,8,512], index: 6, kind: output, shape index: {1}]  }
   0x1   :  { %14 = vsyncpa [#allocation4 + $0x1], 0  ;;  %s1843_s21 = smov 0   ;;  %s1845_s22 = smov 0  }
   0x2   :  { %s1847_s23 = smov 0   ;;  %s1849_s24 = smov 0  }
   0x3   :  { %s1851_s25 = smov 0   ;;  %s1853_s26 = smov 0  }
   0x4   :  { %s1855_s27 = smov 0   ;;  %s1857_s28 = smov 0  }
   0x5 LB: > { %s1434_s29 = sadd.s32 4294967295, %s1805_s28   ;;  %s1435_s30 = sadd.s32 4294967294, %s1805_s28   ;;  %s1805_s28 = sphi %s1857_s28, %s20_s28   ;;  %s1801_s27 = sphi %s1855_s27, %s2589_s27   ;;  %s1797_s26 = sphi %s1853_s26, %s2588_s26   ;;  %s1793_s25 = sphi %s1851_s25, %s2587_s25   ;;  %s1789_s24 = sphi %s1849_s24, %s2586_s24   ;;  %s1785_s23 = sphi %s1847_s23, %s2585_s23   ;;  %s1781_s22 = sphi %s1845_s22, %s2584_s22   ;;  %s1777_s21 = sphi %s1843_s21, %s2583_s21  }
   0x6   : > { %s29_s7 = sadd.s32 1, %s1797_s26  ;;  %s32_s8 = sadd.s32 1, %s1801_s27 }
   0x7   : > { %p30_p0 = scmp.ge.s32.totalorder %s29_s7, 4  ;;  %p48_p1 = scmp.ne.s32.totalorder %s1785_s23, %s1781_s22 }
   0x8   : > { %p49_p2 = scmp.eq.s32.totalorder %s1805_s28, 0  ;;  %p192_p5 = scmp.eq.s32.totalorder %s1434_s29, 7 }
   0x9   : > { %s2591_s7 = smov (%p30_p0, %s29_s7), 0  ;;  %s2593_s8 = smov (!%p30_p0, %s32_s8), %s1801_s27 }
   0xa   : > { %s37_s9 = ssub.s32 %s1797_s26, %s2591_s7  ;;  %p1895_p3 = por %p49_p2, %p48_p1 }
   0xb   : > { %p34_p4 = scmp.ge.s32.totalorder %s2593_s8, 2  ;;  %p197_p6 = scmp.ne.s32.totalorder %s1781_s22, %s1777_s21 }
   0xc   : > { %p198_p7 = scmp.eq.s32.totalorder %s1435_s30, 7  ;;  %p1903_p8 = por %p192_p5, %p48_p1 }
   0xd   : > { %s2595_s8 = smov (%p34_p4, %s2593_s8), 0  ;;  %s41_s15 = sadd.s32 1, %s1785_s23 }
   0xe   : > { %p1907_p9 = por %p198_p7, %p197_p6  ;;  %s36_s13 = ssub.s32 %s1801_s27, %s2595_s8 }
   0xf   : > { %s38_s14 = sor.u32 %s37_s9, %s36_s13  ;;  %p1437_p11 = scmp.ge.s32.totalorder %s1805_s28, 8 }
  0x10   : > { %p39_p10 = scmp.eq.s32.totalorder %s38_s14, 0 }
  0x11   : > { %226 = sbr.rel (%p1437_p11) target bundleno = 93 (0x5d), region = 32 }
  0x12   : > { %s1915_s16 = scalar_select %p39_p10, %s1785_s23, %s41_s15  }
  0x16   : > { %229 = sbr.rel (!%p1895_p3) target bundleno = 93 (0x5d), region = 36  ;;  %s231_s17 = sand.u32 (%p1895_p3), 1, %s1785_s23  }
  0x17   : > { %s1439_s18 = sshll.u32 (%p1895_p3), %s1797_s26, 4  ;;  %s1438_s19 = sshll.u32 (%p1895_p3), %s231_s17, 9 }
  0x18   : > { %s1440_s20 = sshll.u32 (%p1895_p3), %s1801_s27, 8  ;;  %s1931_s10 = scalar_lea.vmem (%p1895_p3), [#allocation2], %s1438_s19 }
  0x19   : > { %s236_s29 = sadd.s32 (%p1895_p3), %s1440_s20, %s1439_s18 }
  0x1a   : > { %s1441_s30 = sshll.u32 (%p1895_p3), %s236_s29, 3 }
  0x1b   : > { %s1926_s14 = scalar_lea.vmem %s2573_s0, %s1441_s30 }
  0x1c   : > { %v393_v0 = vld [vmem:[%s1926_s14] sm:$0xff]  ;;  %v395_v1 = vld [vmem:[%s1926_s14 + $0x8] sm:$0xff]  ;;  %v397_v2 = vld [vmem:[%s1926_s14 + $0x10] sm:$0xff] }
  0x1d   : > { %394 = vst [vmem:[%s1931_s10] sm:$0xff] %v393_v0  ;;  %v399_v3 = vld [vmem:[%s1926_s14 + $0x18] sm:$0xff]  ;;  %v401_v4 = vld [vmem:[%s1926_s14 + $0x20] sm:$0xff]  ;;  %v403_v5 = vld [vmem:[%s1926_s14 + $0x28] sm:$0xff] }
  0x1e   : > { %396 = vst [vmem:[%s1931_s10 + $0x8] sm:$0xff] %v395_v1  ;;  %v405_v6 = vld [vmem:[%s1926_s14 + $0x30] sm:$0xff]  ;;  %v407_v7 = vld [vmem:[%s1926_s14 + $0x38] sm:$0xff]  ;;  %v409_v8 = vld [vmem:[%s1926_s14 + $0x40] sm:$0xff] }
  0x1f   : > { %398 = vst [vmem:[%s1931_s10 + $0x10] sm:$0xff] %v397_v2  ;;  %v411_v9 = vld [vmem:[%s1926_s14 + $0x48] sm:$0xff]  ;;  %v413_v10 = vld [vmem:[%s1926_s14 + $0x50] sm:$0xff]  ;;  %v415_v11 = vld [vmem:[%s1926_s14 + $0x58] sm:$0xff] }
  0x20   : > { %400 = vst [vmem:[%s1931_s10 + $0x18] sm:$0xff] %v399_v3  ;;  %v417_v12 = vld [vmem:[%s1926_s14 + $0x60] sm:$0xff]  ;;  %v419_v13 = vld [vmem:[%s1926_s14 + $0x68] sm:$0xff]  ;;  %v421_v14 = vld [vmem:[%s1926_s14 + $0x70] sm:$0xff] }
  0x21   : > { %402 = vst [vmem:[%s1931_s10 + $0x20] sm:$0xff] %v401_v4  ;;  %v423_v15 = vld [vmem:[%s1926_s14 + $0x78] sm:$0xff]  ;;  %v425_v16 = vld [vmem:[%s1926_s14 + $0x200] sm:$0xff]  ;;  %v427_v17 = vld [vmem:[%s1926_s14 + $0x208] sm:$0xff] }
  0x22   : > { %404 = vst [vmem:[%s1931_s10 + $0x28] sm:$0xff] %v403_v5  ;;  %v429_v18 = vld [vmem:[%s1926_s14 + $0x210] sm:$0xff]  ;;  %v431_v19 = vld [vmem:[%s1926_s14 + $0x218] sm:$0xff]  ;;  %v433_v20 = vld [vmem:[%s1926_s14 + $0x220] sm:$0xff] }
  0x23   : > { %406 = vst [vmem:[%s1931_s10 + $0x30] sm:$0xff] %v405_v6  ;;  %v435_v21 = vld [vmem:[%s1926_s14 + $0x228] sm:$0xff]  ;;  %v437_v22 = vld [vmem:[%s1926_s14 + $0x230] sm:$0xff]  ;;  %v439_v23 = vld [vmem:[%s1926_s14 + $0x238] sm:$0xff] }
  0x24   : > { %408 = vst [vmem:[%s1931_s10 + $0x38] sm:$0xff] %v407_v7  ;;  %v441_v24 = vld [vmem:[%s1926_s14 + $0x240] sm:$0xff]  ;;  %v443_v25 = vld [vmem:[%s1926_s14 + $0x248] sm:$0xff]  ;;  %v445_v26 = vld [vmem:[%s1926_s14 + $0x250] sm:$0xff] }
  0x25   : > { %410 = vst [vmem:[%s1931_s10 + $0x40] sm:$0xff] %v409_v8  ;;  %v447_v27 = vld [vmem:[%s1926_s14 + $0x258] sm:$0xff]  ;;  %v449_v28 = vld [vmem:[%s1926_s14 + $0x260] sm:$0xff]  ;;  %v451_v29 = vld [vmem:[%s1926_s14 + $0x268] sm:$0xff] }
  0x26   : > { %412 = vst [vmem:[%s1931_s10 + $0x48] sm:$0xff] %v411_v9  ;;  %v453_v30 = vld [vmem:[%s1926_s14 + $0x270] sm:$0xff]  ;;  %v455_v31 = vld [vmem:[%s1926_s14 + $0x278] sm:$0xff]  ;;  %v457_v32 = vld [vmem:[%s1926_s14 + $0x400] sm:$0xff] }
  0x27   : > { %414 = vst [vmem:[%s1931_s10 + $0x50] sm:$0xff] %v413_v10  ;;  %v459_v33 = vld [vmem:[%s1926_s14 + $0x408] sm:$0xff]  ;;  %v461_v34 = vld [vmem:[%s1926_s14 + $0x410] sm:$0xff]  ;;  %v463_v35 = vld [vmem:[%s1926_s14 + $0x418] sm:$0xff] }
  0x28   : > { %416 = vst [vmem:[%s1931_s10 + $0x58] sm:$0xff] %v415_v11  ;;  %v465_v36 = vld [vmem:[%s1926_s14 + $0x420] sm:$0xff]  ;;  %v467_v37 = vld [vmem:[%s1926_s14 + $0x428] sm:$0xff]  ;;  %v469_v38 = vld [vmem:[%s1926_s14 + $0x430] sm:$0xff] }
  0x29   : > { %418 = vst [vmem:[%s1931_s10 + $0x60] sm:$0xff] %v417_v12  ;;  %v471_v39 = vld [vmem:[%s1926_s14 + $0x438] sm:$0xff]  ;;  %v473_v40 = vld [vmem:[%s1926_s14 + $0x440] sm:$0xff]  ;;  %v475_v41 = vld [vmem:[%s1926_s14 + $0x448] sm:$0xff] }
  0x2a   : > { %420 = vst [vmem:[%s1931_s10 + $0x68] sm:$0xff] %v419_v13  ;;  %v477_v42 = vld [vmem:[%s1926_s14 + $0x450] sm:$0xff]  ;;  %v479_v43 = vld [vmem:[%s1926_s14 + $0x458] sm:$0xff]  ;;  %v481_v44 = vld [vmem:[%s1926_s14 + $0x460] sm:$0xff] }
  0x2b   : > { %422 = vst [vmem:[%s1931_s10 + $0x70] sm:$0xff] %v421_v14  ;;  %v483_v45 = vld [vmem:[%s1926_s14 + $0x468] sm:$0xff]  ;;  %v485_v46 = vld [vmem:[%s1926_s14 + $0x470] sm:$0xff]  ;;  %v487_v47 = vld [vmem:[%s1926_s14 + $0x478] sm:$0xff] }
  0x2c   : > { %424 = vst [vmem:[%s1931_s10 + $0x78] sm:$0xff] %v423_v15  ;;  %v489_v48 = vld [vmem:[%s1926_s14 + $0x600] sm:$0xff]  ;;  %v491_v49 = vld [vmem:[%s1926_s14 + $0x608] sm:$0xff]  ;;  %v493_v50 = vld [vmem:[%s1926_s14 + $0x610] sm:$0xff] }
  0x2d   : > { %426 = vst [vmem:[%s1931_s10 + $0x80] sm:$0xff] %v425_v16  ;;  %v495_v51 = vld [vmem:[%s1926_s14 + $0x618] sm:$0xff]  ;;  %v497_v52 = vld [vmem:[%s1926_s14 + $0x620] sm:$0xff]  ;;  %v499_v53 = vld [vmem:[%s1926_s14 + $0x628] sm:$0xff] }
  0x2e   : > { %428 = vst [vmem:[%s1931_s10 + $0x88] sm:$0xff] %v427_v17  ;;  %v501_v54 = vld [vmem:[%s1926_s14 + $0x630] sm:$0xff]  ;;  %v503_v55 = vld [vmem:[%s1926_s14 + $0x638] sm:$0xff]  ;;  %v505_v56 = vld [vmem:[%s1926_s14 + $0x640] sm:$0xff] }
  0x2f   : > { %430 = vst [vmem:[%s1931_s10 + $0x90] sm:$0xff] %v429_v18  ;;  %v507_v57 = vld [vmem:[%s1926_s14 + $0x648] sm:$0xff]  ;;  %v509_v58 = vld [vmem:[%s1926_s14 + $0x650] sm:$0xff]  ;;  %v511_v59 = vld [vmem:[%s1926_s14 + $0x658] sm:$0xff] }
  0x30   : > { %432 = vst [vmem:[%s1931_s10 + $0x98] sm:$0xff] %v431_v19  ;;  %v513_v60 = vld [vmem:[%s1926_s14 + $0x660] sm:$0xff]  ;;  %v515_v61 = vld [vmem:[%s1926_s14 + $0x668] sm:$0xff]  ;;  %v517_v62 = vld [vmem:[%s1926_s14 + $0x670] sm:$0xff] }
  0x31   : > { %434 = vst [vmem:[%s1931_s10 + $0xa0] sm:$0xff] %v433_v20  ;;  %v519_v63 = vld [vmem:[%s1926_s14 + $0x678] sm:$0xff] }
  0x32   : > { %436 = vst [vmem:[%s1931_s10 + $0xa8] sm:$0xff] %v435_v21 }
  0x33   : > { %438 = vst [vmem:[%s1931_s10 + $0xb0] sm:$0xff] %v437_v22 }
  0x34   : > { %440 = vst [vmem:[%s1931_s10 + $0xb8] sm:$0xff] %v439_v23 }
  0x35   : > { %442 = vst [vmem:[%s1931_s10 + $0xc0] sm:$0xff] %v441_v24 }
  0x36   : > { %444 = vst [vmem:[%s1931_s10 + $0xc8] sm:$0xff] %v443_v25 }
  0x37   : > { %446 = vst [vmem:[%s1931_s10 + $0xd0] sm:$0xff] %v445_v26 }
  0x38   : > { %448 = vst [vmem:[%s1931_s10 + $0xd8] sm:$0xff] %v447_v27 }
  0x39   : > { %450 = vst [vmem:[%s1931_s10 + $0xe0] sm:$0xff] %v449_v28 }
  0x3a   : > { %452 = vst [vmem:[%s1931_s10 + $0xe8] sm:$0xff] %v451_v29 }
  0x3b   : > { %454 = vst [vmem:[%s1931_s10 + $0xf0] sm:$0xff] %v453_v30 }
  0x3c   : > { %456 = vst [vmem:[%s1931_s10 + $0xf8] sm:$0xff] %v455_v31 }
  0x3d   : > { %458 = vst [vmem:[%s1931_s10 + $0x100] sm:$0xff] %v457_v32 }
  0x3e   : > { %460 = vst [vmem:[%s1931_s10 + $0x108] sm:$0xff] %v459_v33 }
  0x3f   : > { %462 = vst [vmem:[%s1931_s10 + $0x110] sm:$0xff] %v461_v34 }
  0x40   : > { %464 = vst [vmem:[%s1931_s10 + $0x118] sm:$0xff] %v463_v35 }
  0x41   : > { %466 = vst [vmem:[%s1931_s10 + $0x120] sm:$0xff] %v465_v36 }
  0x42   : > { %468 = vst [vmem:[%s1931_s10 + $0x128] sm:$0xff] %v467_v37 }
  0x43   : > { %470 = vst [vmem:[%s1931_s10 + $0x130] sm:$0xff] %v469_v38 }
  0x44   : > { %472 = vst [vmem:[%s1931_s10 + $0x138] sm:$0xff] %v471_v39 }
  0x45   : > { %474 = vst [vmem:[%s1931_s10 + $0x140] sm:$0xff] %v473_v40 }
  0x46   : > { %476 = vst [vmem:[%s1931_s10 + $0x148] sm:$0xff] %v475_v41 }
  0x47   : > { %478 = vst [vmem:[%s1931_s10 + $0x150] sm:$0xff] %v477_v42 }
  0x48   : > { %480 = vst [vmem:[%s1931_s10 + $0x158] sm:$0xff] %v479_v43 }
  0x49   : > { %482 = vst [vmem:[%s1931_s10 + $0x160] sm:$0xff] %v481_v44 }
  0x4a   : > { %484 = vst [vmem:[%s1931_s10 + $0x168] sm:$0xff] %v483_v45 }
  0x4b   : > { %486 = vst [vmem:[%s1931_s10 + $0x170] sm:$0xff] %v485_v46 }
  0x4c   : > { %488 = vst [vmem:[%s1931_s10 + $0x178] sm:$0xff] %v487_v47 }
  0x4d   : > { %490 = vst [vmem:[%s1931_s10 + $0x180] sm:$0xff] %v489_v48 }
  0x4e   : > { %492 = vst [vmem:[%s1931_s10 + $0x188] sm:$0xff] %v491_v49 }
  0x4f   : > { %494 = vst [vmem:[%s1931_s10 + $0x190] sm:$0xff] %v493_v50 }
  0x50   : > { %496 = vst [vmem:[%s1931_s10 + $0x198] sm:$0xff] %v495_v51 }
  0x51   : > { %498 = vst [vmem:[%s1931_s10 + $0x1a0] sm:$0xff] %v497_v52 }
  0x52   : > { %500 = vst [vmem:[%s1931_s10 + $0x1a8] sm:$0xff] %v499_v53 }
  0x53   : > { %502 = vst [vmem:[%s1931_s10 + $0x1b0] sm:$0xff] %v501_v54 }
  0x54   : > { %504 = vst [vmem:[%s1931_s10 + $0x1b8] sm:$0xff] %v503_v55 }
  0x55   : > { %506 = vst [vmem:[%s1931_s10 + $0x1c0] sm:$0xff] %v505_v56 }
  0x56   : > { %508 = vst [vmem:[%s1931_s10 + $0x1c8] sm:$0xff] %v507_v57 }
  0x57   : > { %510 = vst [vmem:[%s1931_s10 + $0x1d0] sm:$0xff] %v509_v58 }
  0x58   : > { %512 = vst [vmem:[%s1931_s10 + $0x1d8] sm:$0xff] %v511_v59 }
  0x59   : > { %514 = vst [vmem:[%s1931_s10 + $0x1e0] sm:$0xff] %v513_v60 }
  0x5a   : > { %516 = vst [vmem:[%s1931_s10 + $0x1e8] sm:$0xff] %v515_v61 }
  0x5b   : > { %518 = vst [vmem:[%s1931_s10 + $0x1f0] sm:$0xff] %v517_v62 }
  0x5c   : > { %520 = vst [vmem:[%s1931_s10 + $0x1f8] sm:$0xff] %v519_v63 }
  0x5d PF: > { %p1442_p12 = scmp.ge.s32.totalorder %s1805_s28, 1  ;;  %p525_p13 = scmp.lt.s32.totalorder %s1805_s28, 9 }
  0x5f   : > { %p526_p0 = pnand %p1442_p12, %p525_p13 }
  0x60   : > { %s2064_s18 = sand.u32 (!%p526_p0), 1, %s1781_s22   ;;  %s1445_s9 = sshll.u32 (!%p526_p0), %s1789_s24, 4 }
  0x61   : > { %529 = sbr.rel (%p526_p0) target bundleno = 376 (0x178), region = 74  ;;  %s1443_s19 = sshll.u32 (!%p526_p0), %s2064_s18, 9 }
  0x62   : > { %s2071_s20 = scalar_lea.vmem (!%p526_p0), [#allocation2], %s1443_s19  ;;  %p572_p1 = scmp.lt.s32.totalorder (!%p526_p0), %s1793_s25, 1 }
  0x63   : > { %p574_p2 = scmp.lt.s32.totalorder (!%p526_p0), %s1445_s9, 63 }
  0x66   : > { %v597_v0 = vld [vmem:[%s2574_s1] sm:$0xff]  ;;  %vm598_vm0 = vcmask 130048   ;;  %v2080_v3 = vld [vmem:[%s2071_s20 + $0x178] sm:$0xff]  ;;  %v2110_v9 = vld [vmem:[%s2071_s20 + $0x170] sm:$0xff]  ;;  %s573_s13 = scalar_select %p572_p1, %s1793_s25, 1  ;;  %vm1267_vm1 = vcmask 64512  }
  0x67   : > { %1514 = vmatpush.xpose.msk.msra.mxu2 %vm598_vm0, %v597_v0  ;;  %1547 = vmatpush.xpose.msk.msra.mxu3 %vm598_vm0, %v597_v0  ;;  %v2074_v1 = vld [vmem:[%s2071_s20 + $0x100] sm:$0xff]  ;;  %v2087_v4 = vld [vmem:[%s2071_s20 + $0x1f8] sm:$0xff]  ;;  %v2113_v10 = vld [vmem:[%s2071_s20 + $0x1f0] sm:$0xff]  ;;  %s2597_s9 = smov (!%p574_p2, %s1445_s9), 63 }
  0x68   : > { %1448 = vmatpush.xpose.msk.msra.mxu0 %vm598_vm0, %v597_v0  ;;  %1481 = vmatpush.xpose.msk.msra.mxu1 %vm598_vm0, %v597_v0  ;;  %v2077_v2 = vld [vmem:[%s2071_s20 + $0x180] sm:$0xff]  ;;  %v2100_v7 = vld [vmem:[%s2071_s20 + $0x78] sm:$0xff]  ;;  %v2120_v11 = vld [vmem:[%s2071_s20 + $0x70] sm:$0xff]  ;;  %s1446_s15 = sshll.u32 %s573_s13, 6  ;;  %s1295_s13 = scalar_lea.sflag [#allocation4], %s2064_s18 }
  0x69   : > { %v2090_v5 = vld [vmem:[%s2071_s20] sm:$0xff]  ;;  %v2103_v8 = vld [vmem:[%s2071_s20 + $0xf8] sm:$0xff]  ;;  %v2123_v12 = vld [vmem:[%s2071_s20 + $0xf0] sm:$0xff]  ;;  %s577_s17 = sadd.s32 %s1446_s15, %s2597_s9  ;;  %s1633_s9 = sshll.u32 %s1793_s25, 2 }
  0x6a   : > { %1515 = vmatmul.msk.f32.vlgmr.msra.gmra.mxu2 %vm598_vm0, %v2074_v1  ;;  %1548 = vmatmul.msk.f32.vlgmr.msra.gmra.mxu3 %vm598_vm0, %v2077_v2  ;;  %v2093_v6 = vld [vmem:[%s2071_s20 + $0x80] sm:$0xff]  ;;  %v2126_v13 = vld [vmem:[%s2071_s20 + $0x108] sm:$0xff]  ;;  %v2186_v25 = vld [vmem:[%s2071_s20 + $0x110] sm:$0xff]  ;;  %s1447_s19 = sshll.u32 %s577_s17, 3  ;;  %s1309_s10 = sadd.s32 %s1789_s24, %s1633_s9 }
  0x6b   : > { %1598 = vmatpush.xpose.msk.msrb.mxu2 %vm598_vm0, %v2080_v3  ;;  %1615 = vmatpush.xpose.msk.msrb.mxu3 %vm598_vm0, %v2087_v4  ;;  %v2129_v14 = vld [vmem:[%s2071_s20 + $0x188] sm:$0xff]  ;;  %v2170_v21 = vld [vmem:[%s2071_s20 + $0x160] sm:$0xff]  ;;  %v2189_v26 = vld [vmem:[%s2071_s20 + $0x190] sm:$0xff]  ;;  %s2478_s14 = scalar_lea.vmem %s2578_s5, %s1447_s19  ;;  %s1444_s15 = sshll.u32 %s2064_s18, 3 }
  0x6c   : > { %1449 = vmatmul.msk.f32.vlgmr.msra.gmra.mxu0 %vm598_vm0, %v2090_v5  ;;  %1482 = vmatmul.msk.f32.vlgmr.msra.gmra.mxu1 %vm598_vm0, %v2093_v6  ;;  %v2136_v15 = vld [vmem:[%s2071_s20 + $0x168] sm:$0xff]  ;;  %v2173_v22 = vld [vmem:[%s2071_s20 + $0x1e0] sm:$0xff]  ;;  %v2196_v27 = vld [vmem:[%s2071_s20 + $0x158] sm:$0xff]  ;;  %s1634_s17 = sshll.u32 %s1309_s10, 3  ;;  %s569_s24 = scalar_lea.vmem [#allocation3], %s1444_s15 }
  0x6d   : > { %1564 = vmatpush.xpose.msk.msrb.mxu0 %vm598_vm0, %v2100_v7  ;;  %1581 = vmatpush.xpose.msk.msrb.mxu1 %vm598_vm0, %v2103_v8  ;;  %v2139_v16 = vld [vmem:[%s2071_s20 + $0x1e8] sm:$0xff]  ;;  %v2180_v23 = vld [vmem:[%s2071_s20 + $0x60] sm:$0xff]  ;;  %v2199_v28 = vld [vmem:[%s2071_s20 + $0x1d8] sm:$0xff]  ;;  %s1313_s29 = sshll.u32 %s569_s24, 4  ;;  %s1731_s19 = scalar_lea.hbm %s2579_s6, 64  ;;  %s1314_s29 = int_to_ptr.vmem [resolvable:$true] %s1313_s29 }
  0x6e   : > { %v2142_v17 = vld [vmem:[%s2071_s20 + $0x8] sm:$0xff]  ;;  %v2183_v24 = vld [vmem:[%s2071_s20 + $0xe0] sm:$0xff]  ;;  %v2202_v29 = vld [vmem:[%s2071_s20 + $0x10] sm:$0xff] }
  0x6f   : > { %1599 = vmatpush.xpose.msk.msrb.mxu2 %vm598_vm0, %v2110_v9  ;;  %1616 = vmatpush.xpose.msk.msrb.mxu3 %vm598_vm0, %v2113_v10  ;;  %v2145_v18 = vld [vmem:[%s2071_s20 + $0x88] sm:$0xff]  ;;  %v2205_v30 = vld [vmem:[%s2071_s20 + $0x90] sm:$0xff]  ;;  %v2216_v31 = vld [vmem:[%s2071_s20 + $0x58] sm:$0xff] }
  0x70   : > { %v2156_v19 = vld [vmem:[%s2071_s20 + $0x68] sm:$0xff]  ;;  %v2219_v32 = vld [vmem:[%s2071_s20 + $0xd8] sm:$0xff]  ;;  %v2234_v33 = vld [vmem:[%s2071_s20 + $0x150] sm:$0xff] }
  0x71   : > { %1565 = vmatpush.xpose.msk.msrb.mxu0 %vm598_vm0, %v2120_v11  ;;  %1582 = vmatpush.xpose.msk.msrb.mxu1 %vm598_vm0, %v2123_v12  ;;  %v2159_v20 = vld [vmem:[%s2071_s20 + $0xe8] sm:$0xff]  ;;  %v2237_v34 = vld [vmem:[%s2071_s20 + $0x1d0] sm:$0xff]  ;;  %v2240_v35 = vld [vmem:[%s2071_s20 + $0x118] sm:$0xff] }
  0x72   : > { %1516 = vmatmul.msk.f32.gmra.mxu2 %vm598_vm0, %v2126_v13  ;;  %1549 = vmatmul.msk.f32.gmra.mxu3 %vm598_vm0, %v2129_v14  ;;  %v2243_v36 = vld [vmem:[%s2071_s20 + $0x198] sm:$0xff]  ;;  %v2250_v37 = vld [vmem:[%s2071_s20 + $0x50] sm:$0xff]  ;;  %v2270_v41 = vld [vmem:[%s2071_s20 + $0x148] sm:$0xff] }
  0x73   : > { %1600 = vmatpush.xpose.msk.msrb.mxu2 %vm598_vm0, %v2136_v15  ;;  %1617 = vmatpush.xpose.msk.msrb.mxu3 %vm598_vm0, %v2139_v16  ;;  %v2253_v38 = vld [vmem:[%s2071_s20 + $0xd0] sm:$0xff]  ;;  %v2256_v39 = vld [vmem:[%s2071_s20 + $0x18] sm:$0xff]  ;;  %v2273_v42 = vld [vmem:[%s2071_s20 + $0x1c8] sm:$0xff] }
  0x74   : > { %1450 = vmatmul.msk.f32.gmra.mxu0 %vm598_vm0, %v2142_v17  ;;  %1483 = vmatmul.msk.f32.gmra.mxu1 %vm598_vm0, %v2145_v18  ;;  %v2259_v40 = vld [vmem:[%s2071_s20 + $0x98] sm:$0xff]  ;;  %v2284_v43 = vld [vmem:[%s2071_s20 + $0x48] sm:$0xff]  ;;  %v2294_v45 = vld [vmem:[%s2071_s20 + $0x140] sm:$0xff] }
  0x75   : > { %1566 = vmatpush.xpose.msk.msrb.mxu0 %vm598_vm0, %v2156_v19  ;;  %1583 = vmatpush.xpose.msk.msrb.mxu1 %vm598_vm0, %v2159_v20  ;;  %v2287_v44 = vld [vmem:[%s2071_s20 + $0xc8] sm:$0xff]  ;;  %v2297_v46 = vld [vmem:[%s2071_s20 + $0x1c0] sm:$0xff]  ;;  %v1505_v53 = vld [vmem:[%s2071_s20 + $0x138] sm:$0xff] }
  0x76   : > { %v1502_v47 = vld [vmem:[%s2071_s20 + $0x120] sm:$0xff]  ;;  %v1538_v54 = vld [vmem:[%s2071_s20 + $0x1b8] sm:$0xff]  ;;  %v1504_v57 = vld [vmem:[%s2071_s20 + $0x130] sm:$0xff] }
  0x77   : > { %1601 = vmatpush.xpose.msk.msrb.mxu2 %vm598_vm0, %v2170_v21  ;;  %1618 = vmatpush.xpose.msk.msrb.mxu3 %vm598_vm0, %v2173_v22  ;;  %v1535_v48 = vld [vmem:[%s2071_s20 + $0x1a0] sm:$0xff]  ;;  %v588_v55 = vld [vmem:[%s2071_s20 + $0x38] sm:$0xff]  ;;  %v1537_v58 = vld [vmem:[%s2071_s20 + $0x1b0] sm:$0xff] }
  0x78   : > { %v2306_v49 = vld [vmem:[%s2071_s20 + $0x40] sm:$0xff]  ;;  %v1472_v56 = vld [vmem:[%s2071_s20 + $0xb8] sm:$0xff]  ;;  %v1503_v59 = vld [vmem:[%s2071_s20 + $0x128] sm:$0xff] }
  0x79   : > { %1567 = vmatpush.xpose.msk.msrb.mxu0 %vm598_vm0, %v2180_v23  ;;  %1584 = vmatpush.xpose.msk.msrb.mxu1 %vm598_vm0, %v2183_v24  ;;  %v2309_v50 = vld [vmem:[%s2071_s20 + $0xc0] sm:$0xff]  ;;  %v1536_v60 = vld [vmem:[%s2071_s20 + $0x1a8] sm:$0xff]  ;;  %v587_v61 = vld [vmem:[%s2071_s20 + $0x30] sm:$0xff] }
  0x7a   : > { %1517 = vmatmul.msk.f32.gmra.mxu2 %vm598_vm0, %v2186_v25  ;;  %1550 = vmatmul.msk.f32.gmra.mxu3 %vm598_vm0, %v2189_v26  ;;  %v585_v51 = vld [vmem:[%s2071_s20 + $0x20] sm:$0xff]  ;;  %v1471_v62 = vld [vmem:[%s2071_s20 + $0xb0] sm:$0xff]  ;;  %v586_v63 = vld [vmem:[%s2071_s20 + $0x28] sm:$0xff] }
  0x7b   : > { %1602 = vmatpush.xpose.msk.msrb.mxu2 %vm598_vm0, %v2196_v27  ;;  %1619 = vmatpush.xpose.msk.msrb.mxu3 %vm598_vm0, %v2199_v28  ;;  %v1469_v52 = vld [vmem:[%s2071_s20 + $0xa0] sm:$0xff]  ;;  %v1470_v0 = vld [vmem:[%s2071_s20 + $0xa8] sm:$0xff]  ;;  %s1311_s20 = scalar_lea.hbm %s2579_s6, %s1634_s17 }
  0x7c   : > { %1451 = vmatmul.msk.f32.gmra.mxu0 %vm598_vm0, %v2202_v29  ;;  %1484 = vmatmul.msk.f32.gmra.mxu1 %vm598_vm0, %v2205_v30  ;;  %s1315_s30 = sshll.u32 %s1311_s20, 4  ;;  %s1316_s30 = int_to_ptr.hbm [resolvable:$true] %s1315_s30 }
  0x7d   : > { %1568 = vmatpush.xpose.msk.msrb.mxu0 %vm598_vm0, %v2216_v31  ;;  %1585 = vmatpush.xpose.msk.msrb.mxu1 %vm598_vm0, %v2219_v32 }
  0x7f   : > { %1603 = vmatpush.xpose.msk.msrb.mxu2 %vm598_vm0, %v2234_v33  ;;  %1620 = vmatpush.xpose.msk.msrb.mxu3 %vm598_vm0, %v2237_v34 }
  0x81   : > { %1569 = vmatpush.xpose.msk.msrb.mxu0 %vm598_vm0, %v2250_v37  ;;  %1586 = vmatpush.xpose.msk.msrb.mxu1 %vm598_vm0, %v2253_v38 }
  0x82   : > { %1518 = vmatmul.msk.f32.gmra.mxu2 %vm598_vm0, %v2240_v35  ;;  %1551 = vmatmul.msk.f32.gmra.mxu3 %vm598_vm0, %v2243_v36 }
  0x83   : > { %1604 = vmatpush.xpose.msk.msrb.mxu2 %vm598_vm0, %v2270_v41  ;;  %1621 = vmatpush.xpose.msk.msrb.mxu3 %vm598_vm0, %v2273_v42 }
  0x84   : > { %1452 = vmatmul.msk.f32.gmra.mxu0 %vm598_vm0, %v2256_v39  ;;  %1485 = vmatmul.msk.f32.gmra.mxu1 %vm598_vm0, %v2259_v40 }
  0x85   : > { %1570 = vmatpush.xpose.msk.msrb.mxu0 %vm598_vm0, %v2284_v43  ;;  %1587 = vmatpush.xpose.msk.msrb.mxu1 %vm598_vm0, %v2287_v44 }
  0x87   : > { %1605 = vmatpush.xpose.msk.msrb.mxu2 %vm598_vm0, %v2294_v45  ;;  %1622 = vmatpush.xpose.msk.msrb.mxu3 %vm598_vm0, %v2297_v46 }
  0x89   : > { %1571 = vmatpush.xpose.msk.msrb.mxu0 %vm598_vm0, %v2306_v49  ;;  %1588 = vmatpush.xpose.msk.msrb.mxu1 %vm598_vm0, %v2309_v50 }
  0x8a   : > { %1519 = vmatmul.msk.f32.gmra.mxu2 %vm598_vm0, %v1502_v47  ;;  %1552 = vmatmul.msk.f32.gmra.mxu3 %vm598_vm0, %v1535_v48 }
  0x8b   : > { %1606 = vmatpush.xpose.msk.msrb.mxu2 %vm598_vm0, %v1505_v53  ;;  %1623 = vmatpush.xpose.msk.msrb.mxu3 %vm598_vm0, %v1538_v54 }
  0x8c   : > { %1453 = vmatmul.msk.f32.gmra.mxu0 %vm598_vm0, %v585_v51  ;;  %1486 = vmatmul.msk.f32.gmra.mxu1 %vm598_vm0, %v1469_v52 }
  0x8d   : > { %1572 = vmatpush.xpose.msk.msrb.mxu0 %vm598_vm0, %v588_v55  ;;  %1589 = vmatpush.xpose.msk.msrb.mxu1 %vm598_vm0, %v1472_v56 }
  0x8f   : > { %1607 = vmatpush.xpose.msk.msrb.mxu2 %vm598_vm0, %v1504_v57  ;;  %1624 = vmatpush.xpose.msk.msrb.mxu3 %vm598_vm0, %v1537_v58 }
  0x91   : > { %1573 = vmatpush.xpose.msk.msrb.mxu0 %vm598_vm0, %v587_v61  ;;  %1590 = vmatpush.xpose.msk.msrb.mxu1 %vm598_vm0, %v1471_v62 }
  0x92   : > { %1520 = vmatmul.msk.f32.gmra.mxu2 %vm598_vm0, %v1503_v59  ;;  %1553 = vmatmul.msk.f32.gmra.mxu3 %vm598_vm0, %v1536_v60 }
  0x93   : > { %1608 = vmatpush.xpose.msk.msrb.mxu2 %vm598_vm0, %v1503_v59  ;;  %1625 = vmatpush.xpose.msk.msrb.mxu3 %vm598_vm0, %v1536_v60 }
  0x94   : > { %1454 = vmatmul.msk.f32.gmra.mxu0 %vm598_vm0, %v586_v63  ;;  %1487 = vmatmul.msk.f32.gmra.mxu1 %vm598_vm0, %v1470_v0 }
  0x95   : > { %1574 = vmatpush.xpose.msk.msrb.mxu0 %vm598_vm0, %v586_v63  ;;  %1591 = vmatpush.xpose.msk.msrb.mxu1 %vm598_vm0, %v1470_v0 }
  0x97   : > { %1609 = vmatpush.xpose.msk.msrb.mxu2 %vm598_vm0, %v1502_v47  ;;  %1626 = vmatpush.xpose.msk.msrb.mxu3 %vm598_vm0, %v1535_v48 }
  0x99   : > { %1575 = vmatpush.xpose.msk.msrb.mxu0 %vm598_vm0, %v585_v51  ;;  %1592 = vmatpush.xpose.msk.msrb.mxu1 %vm598_vm0, %v1469_v52 }
  0x9a   : > { %1521 = vmatmul.msk.f32.gmra.mxu2 %vm598_vm0, %v1504_v57  ;;  %1554 = vmatmul.msk.f32.gmra.mxu3 %vm598_vm0, %v1537_v58 }
  0x9b   : > { %1610 = vmatpush.xpose.msk.msrb.mxu2 %vm598_vm0, %v2240_v35  ;;  %1627 = vmatpush.xpose.msk.msrb.mxu3 %vm598_vm0, %v2243_v36 }
  0x9c   : > { %1455 = vmatmul.msk.f32.gmra.mxu0 %vm598_vm0, %v587_v61  ;;  %1488 = vmatmul.msk.f32.gmra.mxu1 %vm598_vm0, %v1471_v62 }
  0x9d   : > { %1576 = vmatpush.xpose.msk.msrb.mxu0 %vm598_vm0, %v2256_v39  ;;  %1593 = vmatpush.xpose.msk.msrb.mxu1 %vm598_vm0, %v2259_v40 }
  0x9f   : > { %1611 = vmatpush.xpose.msk.msrb.mxu2 %vm598_vm0, %v2186_v25  ;;  %1628 = vmatpush.xpose.msk.msrb.mxu3 %vm598_vm0, %v2189_v26 }
  0xa1   : > { %1577 = vmatpush.xpose.msk.msrb.mxu0 %vm598_vm0, %v2202_v29  ;;  %1594 = vmatpush.xpose.msk.msrb.mxu1 %vm598_vm0, %v2205_v30 }
  0xa2   : > { %1522 = vmatmul.msk.f32.gmra.mxu2 %vm598_vm0, %v1505_v53  ;;  %1555 = vmatmul.msk.f32.gmra.mxu3 %vm598_vm0, %v1538_v54 }
  0xa3   : > { %1612 = vmatpush.xpose.msk.msrb.mxu2 %vm598_vm0, %v2126_v13  ;;  %1629 = vmatpush.xpose.msk.msrb.mxu3 %vm598_vm0, %v2129_v14 }
  0xa4   : > { %1456 = vmatmul.msk.f32.gmra.mxu0 %vm598_vm0, %v588_v55  ;;  %1489 = vmatmul.msk.f32.gmra.mxu1 %vm598_vm0, %v1472_v56 }
  0xa5   : > { %1578 = vmatpush.xpose.msk.msrb.mxu0 %vm598_vm0, %v2142_v17  ;;  %1595 = vmatpush.xpose.msk.msrb.mxu1 %vm598_vm0, %v2145_v18 }
  0xa7   : > { %1613 = vmatpush.xpose.msk.msrb.mxu2 %vm598_vm0, %v2074_v1  ;;  %1630 = vmatpush.xpose.msk.msrb.mxu3 %vm598_vm0, %v2077_v2  ;;  %v1807_v1 = vmov 0   ;;  %v1260_v2 = vld [vmem:[%s2577_s4] sm:$0xff] }
  0xa8   : > { %1709 = vset.pattern.permute.xlu0 %v1807_v1 }
  0xa9   : > { %1579 = vmatpush.xpose.msk.msrb.mxu0 %vm598_vm0, %v2090_v5  ;;  %1596 = vmatpush.xpose.msk.msrb.mxu1 %vm598_vm0, %v2093_v6  ;;  %v1173_v5 = vld [vmem:[%s2576_s3] sm:$0xff] }
  0xaa   : > { %1523 = vmatmul.msk.f32.gmra.mxu2 %vm598_vm0, %v2294_v45  ;;  %1556 = vmatmul.msk.f32.gmra.mxu3 %vm598_vm0, %v2297_v46 }
  0xab   : > { %1263 = vperm.xlu0 %1709, %v1260_v2  }
  0xac   : > { %1457 = vmatmul.msk.f32.gmra.mxu0 %vm598_vm0, %v2306_v49  ;;  %1490 = vmatmul.msk.f32.gmra.mxu1 %vm598_vm0, %v2309_v50 }
  0xb2   : > { %1524 = vmatmul.msk.f32.gmra.mxu2 %vm598_vm0, %v2270_v41  ;;  %1557 = vmatmul.msk.f32.gmra.mxu3 %vm598_vm0, %v2273_v42 }
  0xb4   : > { %1458 = vmatmul.msk.f32.gmra.mxu0 %vm598_vm0, %v2284_v43  ;;  %1491 = vmatmul.msk.f32.gmra.mxu1 %vm598_vm0, %v2287_v44 }
  0xba   : > { %1525 = vmatmul.msk.f32.gmra.mxu2 %vm598_vm0, %v2234_v33  ;;  %1558 = vmatmul.msk.f32.gmra.mxu3 %vm598_vm0, %v2237_v34 }
  0xbc   : > { %1459 = vmatmul.msk.f32.gmra.mxu0 %vm598_vm0, %v2250_v37  ;;  %1492 = vmatmul.msk.f32.gmra.mxu1 %vm598_vm0, %v2253_v38 }
  0xc2   : > { %1526 = vmatmul.msk.f32.gmra.mxu2 %vm598_vm0, %v2196_v27  ;;  %1559 = vmatmul.msk.f32.gmra.mxu3 %vm598_vm0, %v2199_v28 }
  0xc4   : > { %1460 = vmatmul.msk.f32.gmra.mxu0 %vm598_vm0, %v2216_v31  ;;  %1493 = vmatmul.msk.f32.gmra.mxu1 %vm598_vm0, %v2219_v32 }
  0xca   : > { %1527 = vmatmul.msk.f32.gmra.mxu2 %vm598_vm0, %v2170_v21  ;;  %1560 = vmatmul.msk.f32.gmra.mxu3 %vm598_vm0, %v2173_v22 }
  0xcc   : > { %1461 = vmatmul.msk.f32.gmra.mxu0 %vm598_vm0, %v2180_v23  ;;  %1494 = vmatmul.msk.f32.gmra.mxu1 %vm598_vm0, %v2183_v24 }
  0xd2   : > { %1528 = vmatmul.msk.f32.gmra.mxu2 %vm598_vm0, %v2136_v15  ;;  %1561 = vmatmul.msk.f32.gmra.mxu3 %vm598_vm0, %v2139_v16 }
  0xd4   : > { %1462 = vmatmul.msk.f32.gmra.mxu0 %vm598_vm0, %v2156_v19  ;;  %1495 = vmatmul.msk.f32.gmra.mxu1 %vm598_vm0, %v2159_v20 }
  0xda   : > { %1529 = vmatmul.msk.f32.gmra.mxu2 %vm598_vm0, %v2110_v9  ;;  %1562 = vmatmul.msk.f32.gmra.mxu3 %vm598_vm0, %v2113_v10  ;;  %v2473_v10 = vld [vmem:[%s2575_s2] ss:$0 sm:$0xff] }
  0xdc   : > { %1463 = vmatmul.msk.f32.gmra.mxu0 %vm598_vm0, %v2120_v11  ;;  %1496 = vmatmul.msk.f32.gmra.mxu1 %vm598_vm0, %v2123_v12 }
  0xe2   : > { %1530 = vmatmul.msk.f32.gmra.mxu2 %vm598_vm0, %v2080_v3  ;;  %1563 = vmatmul.msk.f32.gmra.mxu3 %vm598_vm0, %v2087_v4 }
  0xe4   : > { %1464 = vmatmul.msk.f32.gmra.mxu0 %vm598_vm0, %v2100_v7  ;;  %1497 = vmatmul.msk.f32.gmra.mxu1 %vm598_vm0, %v2103_v8 }
  0xe9   : > { %v667_v6 = vpop.f32.mrf.mxu0  ;;  %v797_v9 = vpop.f32.mrf.mxu1 }
  0xea   : > { %1614 = vmatmul.msk.f32.vlgmr.msrb.gmra.mxu2 %vm598_vm0, %v1173_v5  ;;  %1631 = vmatmul.msk.f32.vlgmr.msrb.gmra.mxu3 %vm598_vm0, %v1173_v5  ;;  %v845_v3 = vmax.f32 %v667_v6, %v797_v9 }
  0xec   : > { %1580 = vmatmul.msk.f32.vlgmr.msrb.gmra.mxu0 %vm598_vm0, %v1173_v5  ;;  %1597 = vmatmul.msk.f32.vlgmr.msrb.gmra.mxu1 %vm598_vm0, %v1173_v5 }
  0xed   : > { %v943_v4 = vpop.f32.mrf.mxu2  ;;  %v1073_v7 = vpop.f32.mrf.mxu3 }
  0xee   : > { %v1121_v8 = vmax.f32 %v943_v4, %v1073_v7 }
  0xf0   : > { %v1137_v11 = vmax.f32 %v845_v3, %v1121_v8 }
  0xf1   : > { %v670_v12 = vpop.f32.mrf.mxu0  ;;  %v800_v13 = vpop.f32.mrf.mxu1 }
  0xf2   : > { %v1157_v14 = vadd.f32 %v2473_v10, %v1137_v11  ;;  %v846_v15 = vmax.f32 %v670_v12, %v800_v13 }
  0xf4   : > { %1268 = vst.msk [vmem:[%s2478_s14] sm:$0xff] %vm1267_vm1, %v1157_v14 }
  0xf5   : > { %v946_v16 = vpop.f32.mrf.mxu2  ;;  %v1076_v17 = vpop.f32.mrf.mxu3 }
  0xf6   : > { %v1122_v18 = vmax.f32 %v946_v16, %v1076_v17 }
  0xf8   : > { %v1138_v19 = vmax.f32 %v846_v15, %v1122_v18 }
  0xf9   : > { %v673_v20 = vpop.f32.mrf.mxu0  ;;  %v803_v21 = vpop.f32.mrf.mxu1 }
  0xfa   : > { %v1158_v22 = vadd.f32 %v2473_v10, %v1138_v19  ;;  %v847_v23 = vmax.f32 %v673_v20, %v803_v21 }
  0xfc   : > { %1269 = vst.msk [vmem:[%s2478_s14 + $0x8] sm:$0xff] %vm1267_vm1, %v1158_v22 }
  0xfd   : > { %v949_v24 = vpop.f32.mrf.mxu2  ;;  %v1079_v25 = vpop.f32.mrf.mxu3 }
  0xfe   : > { %v1123_v26 = vmax.f32 %v949_v24, %v1079_v25 }
 0x100   : > { %v1139_v27 = vmax.f32 %v847_v23, %v1123_v26 }
 0x101   : > { %v676_v28 = vpop.f32.mrf.mxu0  ;;  %v806_v29 = vpop.f32.mrf.mxu1 }
 0x102   : > { %v1159_v30 = vadd.f32 %v2473_v10, %v1139_v27  ;;  %v848_v31 = vmax.f32 %v676_v28, %v806_v29 }
 0x104   : > { %1270 = vst.msk [vmem:[%s2478_s14 + $0x10] sm:$0xff] %vm1267_vm1, %v1159_v30 }
 0x105   : > { %v952_v32 = vpop.f32.mrf.mxu2  ;;  %v1082_v33 = vpop.f32.mrf.mxu3 }
 0x106   : > { %v1124_v34 = vmax.f32 %v952_v32, %v1082_v33 }
 0x108   : > { %v1140_v35 = vmax.f32 %v848_v31, %v1124_v34 }
 0x109   : > { %v679_v36 = vpop.f32.mrf.mxu0  ;;  %v809_v37 = vpop.f32.mrf.mxu1 }
 0x10a   : > { %v1160_v38 = vadd.f32 %v2473_v10, %v1140_v35  ;;  %v849_v39 = vmax.f32 %v679_v36, %v809_v37 }
 0x10c   : > { %1271 = vst.msk [vmem:[%s2478_s14 + $0x18] sm:$0xff] %vm1267_vm1, %v1160_v38 }
 0x10d   : > { %v955_v40 = vpop.f32.mrf.mxu2  ;;  %v1085_v41 = vpop.f32.mrf.mxu3 }
 0x10e   : > { %v1125_v42 = vmax.f32 %v955_v40, %v1085_v41 }
 0x110   : > { %v1141_v43 = vmax.f32 %v849_v39, %v1125_v42 }
 0x111   : > { %v682_v44 = vpop.f32.mrf.mxu0  ;;  %v812_v45 = vpop.f32.mrf.mxu1 }
 0x112   : > { %v1161_v46 = vadd.f32 %v2473_v10, %v1141_v43  ;;  %v850_v47 = vmax.f32 %v682_v44, %v812_v45 }
 0x114   : > { %1272 = vst.msk [vmem:[%s2478_s14 + $0x20] sm:$0xff] %vm1267_vm1, %v1161_v46 }
 0x115   : > { %v958_v48 = vpop.f32.mrf.mxu2  ;;  %v1088_v49 = vpop.f32.mrf.mxu3 }
 0x116   : > { %v1126_v50 = vmax.f32 %v958_v48, %v1088_v49 }
 0x118   : > { %v1142_v51 = vmax.f32 %v850_v47, %v1126_v50 }
 0x119   : > { %v685_v52 = vpop.f32.mrf.mxu0  ;;  %v815_v53 = vpop.f32.mrf.mxu1 }
 0x11a   : > { %v1162_v54 = vadd.f32 %v2473_v10, %v1142_v51  ;;  %v851_v55 = vmax.f32 %v685_v52, %v815_v53 }
 0x11c   : > { %1273 = vst.msk [vmem:[%s2478_s14 + $0x28] sm:$0xff] %vm1267_vm1, %v1162_v54 }
 0x11d   : > { %v961_v56 = vpop.f32.mrf.mxu2  ;;  %v1091_v57 = vpop.f32.mrf.mxu3 }
 0x11e   : > { %v1127_v58 = vmax.f32 %v961_v56, %v1091_v57 }
 0x120   : > { %v1143_v59 = vmax.f32 %v851_v55, %v1127_v58 }
 0x121   : > { %v688_v60 = vpop.f32.mrf.mxu0  ;;  %v818_v61 = vpop.f32.mrf.mxu1 }
 0x122   : > { %v1163_v62 = vadd.f32 %v2473_v10, %v1143_v59  ;;  %v852_v63 = vmax.f32 %v688_v60, %v818_v61 }
 0x124   : > { %1274 = vst.msk [vmem:[%s2478_s14 + $0x30] sm:$0xff] %vm1267_vm1, %v1163_v62 }
 0x125   : > { %v964_v0 = vpop.f32.mrf.mxu2  ;;  %v1094_v1 = vpop.f32.mrf.mxu3 }
 0x126   : > { %v1128_v2 = vmax.f32 %v964_v0, %v1094_v1 }
 0x128   : > { %v1144_v5 = vmax.f32 %v852_v63, %v1128_v2 }
 0x129   : > { %v691_v6 = vpop.f32.mrf.mxu0  ;;  %v821_v9 = vpop.f32.mrf.mxu1 }
 0x12a   : > { %v1164_v3 = vadd.f32 %v2473_v10, %v1144_v5  ;;  %v853_v4 = vmax.f32 %v691_v6, %v821_v9 }
 0x12c   : > { %1275 = vst.msk [vmem:[%s2478_s14 + $0x38] sm:$0xff] %vm1267_vm1, %v1164_v3 }
 0x12d   : > { %v967_v7 = vpop.f32.mrf.mxu2  ;;  %v1097_v8 = vpop.f32.mrf.mxu3 }
 0x12e   : > { %v1129_v11 = vmax.f32 %v967_v7, %v1097_v8 }
 0x130   : > { %v1145_v12 = vmax.f32 %v853_v4, %v1129_v11 }
 0x131   : > { %v694_v13 = vpop.f32.mrf.mxu0  ;;  %v824_v14 = vpop.f32.mrf.mxu1 }
 0x132   : > { %v1165_v15 = vadd.f32 %v2473_v10, %v1145_v12  ;;  %v854_v16 = vmax.f32 %v694_v13, %v824_v14  ;;  %v1264_v13 = vpop.permute.xlu0 %1263 }
 0x134   : > { %1276 = vst.msk [vmem:[%s2478_s14 + $0x40] sm:$0xff] %vm1267_vm1, %v1165_v15 }
 0x135   : > { %v970_v17 = vpop.f32.mrf.mxu2  ;;  %v1100_v18 = vpop.f32.mrf.mxu3 }
 0x136   : > { %v1130_v19 = vmax.f32 %v970_v17, %v1100_v18 }
 0x138   : > { %v1146_v20 = vmax.f32 %v854_v16, %v1130_v19 }
 0x139   : > { %v697_v21 = vpop.f32.mrf.mxu0  ;;  %v827_v22 = vpop.f32.mrf.mxu1 }
 0x13a   : > { %v1166_v23 = vadd.f32 %v2473_v10, %v1146_v20  ;;  %v855_v24 = vmax.f32 %v697_v21, %v827_v22 }
 0x13c   : > { %1277 = vst.msk [vmem:[%s2478_s14 + $0x48] sm:$0xff] %vm1267_vm1, %v1166_v23 }
 0x13d   : > { %v973_v25 = vpop.f32.mrf.mxu2  ;;  %v1103_v26 = vpop.f32.mrf.mxu3 }
 0x13e   : > { %v1131_v27 = vmax.f32 %v973_v25, %v1103_v26 }
 0x140   : > { %v1147_v28 = vmax.f32 %v855_v24, %v1131_v27 }
 0x141   : > { %v700_v29 = vpop.f32.mrf.mxu0  ;;  %v830_v30 = vpop.f32.mrf.mxu1 }
 0x142   : > { %v1167_v31 = vadd.f32 %v2473_v10, %v1147_v28  ;;  %v856_v32 = vmax.f32 %v700_v29, %v830_v30 }
 0x144   : > { %1278 = vst.msk [vmem:[%s2478_s14 + $0x50] sm:$0xff] %vm1267_vm1, %v1167_v31 }
 0x145   : > { %v976_v33 = vpop.f32.mrf.mxu2  ;;  %v1106_v34 = vpop.f32.mrf.mxu3 }
 0x146   : > { %v1132_v35 = vmax.f32 %v976_v33, %v1106_v34 }
 0x148   : > { %v1148_v36 = vmax.f32 %v856_v32, %v1132_v35 }
 0x149   : > { %v703_v37 = vpop.f32.mrf.mxu0  ;;  %v833_v38 = vpop.f32.mrf.mxu1 }
 0x14a   : > { %v1168_v39 = vadd.f32 %v2473_v10, %v1148_v36  ;;  %v857_v40 = vmax.f32 %v703_v37, %v833_v38 }
 0x14c   : > { %1279 = vst.msk [vmem:[%s2478_s14 + $0x58] sm:$0xff] %vm1267_vm1, %v1168_v39 }
 0x14d   : > { %v979_v41 = vpop.f32.mrf.mxu2  ;;  %v1109_v42 = vpop.f32.mrf.mxu3 }
 0x14e   : > { %v1133_v43 = vmax.f32 %v979_v41, %v1109_v42 }
 0x150   : > { %v1149_v44 = vmax.f32 %v857_v40, %v1133_v43 }
 0x151   : > { %v706_v45 = vpop.f32.mrf.mxu0  ;;  %v836_v46 = vpop.f32.mrf.mxu1 }
 0x152   : > { %v1169_v47 = vadd.f32 %v2473_v10, %v1149_v44  ;;  %v858_v48 = vmax.f32 %v706_v45, %v836_v46 }
 0x154   : > { %1280 = vst.msk [vmem:[%s2478_s14 + $0x60] sm:$0xff] %vm1267_vm1, %v1169_v47 }
 0x155   : > { %v982_v49 = vpop.f32.mrf.mxu2  ;;  %v1112_v50 = vpop.f32.mrf.mxu3 }
 0x156   : > { %v1134_v51 = vmax.f32 %v982_v49, %v1112_v50 }
 0x158   : > { %v1150_v52 = vmax.f32 %v858_v48, %v1134_v51 }
 0x159   : > { %v709_v53 = vpop.f32.mrf.mxu0  ;;  %v839_v54 = vpop.f32.mrf.mxu1 }
 0x15a   : > { %v1170_v55 = vadd.f32 %v2473_v10, %v1150_v52  ;;  %v859_v56 = vmax.f32 %v709_v53, %v839_v54 }
 0x15c   : > { %1281 = vst.msk [vmem:[%s2478_s14 + $0x68] sm:$0xff] %vm1267_vm1, %v1170_v55 }
 0x15d   : > { %v985_v57 = vpop.f32.mrf.mxu2  ;;  %v1115_v58 = vpop.f32.mrf.mxu3 }
 0x15e   : > { %v1135_v59 = vmax.f32 %v985_v57, %v1115_v58 }
 0x160   : > { %v1151_v60 = vmax.f32 %v859_v56, %v1135_v59 }
 0x161   : > { %v712_v61 = vpop.f32.mrf.mxu0  ;;  %v842_v62 = vpop.f32.mrf.mxu1 }
 0x162   : > { %v1171_v63 = vadd.f32 %v2473_v10, %v1151_v60  ;;  %v860_v0 = vmax.f32 %v712_v61, %v842_v62 }
 0x164   : > { %1282 = vst.msk [vmem:[%s2478_s14 + $0x70] sm:$0xff] %vm1267_vm1, %v1171_v63 }
 0x165   : > { %v988_v1 = vpop.f32.mrf.mxu2  ;;  %v1118_v2 = vpop.f32.mrf.mxu3 }
 0x166   : > { %v1136_v5 = vmax.f32 %v988_v1, %v1118_v2 }
 0x168   : > { %v1152_v6 = vmax.f32 %v860_v0, %v1136_v5 }
 0x169   : > { %v1194_v9 = vpop.f32.mrf.mxu0  ;;  %v1214_v3 = vpop.f32.mrf.mxu1 }
 0x16a   : > { %v1172_v4 = vadd.f32 %v2473_v10, %v1152_v6  ;;  %v1217_v7 = vmax.f32 %v1194_v9, %v1214_v3 }
 0x16c   : > { %1283 = vst.msk [vmem:[%s2478_s14 + $0x78] sm:$0xff] %vm1267_vm1, %v1172_v4  ;;  %s1725_s14 = sshra.s32 %s1316_s30, 4  ;;  %s1726_s14 = int_to_ptr.hbm [resolvable:$true] %s1725_s14 }
 0x16d   : > { %v1235_v8 = vpop.f32.mrf.mxu2  ;;  %v1255_v11 = vpop.f32.mrf.mxu3  ;;  %s1727_s9 = scalar_lea.hbm %s1726_s14, 8  ;;  %p1732_p6 = scmp.lt.s32.totalorder %s1726_s14, %s2579_s6 }
 0x16e   : > { %v1258_v12 = vmax.f32 %v1235_v8, %v1255_v11  ;;  %p1728_p3 = scmp.ne.s32.totalorder %s1726_s14, %s1727_s9  ;;  %p1733_p7 = scmp.lt.s32.totalorder %s1731_s19, %s1727_s9 }
 0x170   : > { %v1259_v14 = vmax.f32 %v1217_v7, %v1258_v12  ;;  %p1729_p4 = pnand %p1728_p3, %p1903_p8  ;;  %p1734_p10 = por %p1733_p7, %p1732_p6 }
 0x172   : > { %v1266_v15 = vadd.f32 %v1264_v13, %v1259_v14  ;;  %p1730_p5 = pneg %p1729_p4 }
 0x174   : > { %1284 = vst [vmem:[%s569_s24] sm:$0xff] %v1266_v15  ;;  %p1735_p11 = pnand %p1734_p10, %p1730_p5 }
 0x176   : > { %1738 = shalt.err (!%p1735_p11)
}
 0x177   : > { %1637 = dma.vmem_to_hbm [thread:$0]  (%p1903_p8), %s1314_s29, 128, %s1316_s30, %s1295_s13  }
 0x178 PF: > { %p1643_p12 = scmp.ge.s32.totalorder %s1805_s28, 2  ;;  %s1339_s18 = sand.u32 1, %s1777_s21  }
 0x179   : > { %s1340_s20 = scalar_lea.sflag [#allocation4], %s1339_s18 }
 0x17a   : > { %p1640_p13 = pnand %p1643_p12, %p1907_p9 }
 0x17c   : > { %p1641_p0 = pneg %p1640_p13 }
 0x17e   : > { %1772 = dma.done.wait (%p1641_p0), %s1340_s20, 128  }
 0x17f   : > { %1774 = vsyncadd (%p1641_p0), %s1340_s20, 4294967168  ;;  %s20_s28 = sadd.s32 1, %s1805_s28   ;;  %s2583_s21 = smov %s1781_s22 }
 0x180   : > { %p17_p1 = scmp.ge.s32.totalorder %s20_s28, 10   ;;  %s2584_s22 = smov %s1785_s23 }
 0x181   : > { %s2585_s23 = smov %s1915_s16  ;;  %s2586_s24 = smov %s1797_s26 }
 0x182   : > { %s2587_s25 = smov %s1801_s27  ;;  %s2588_s26 = smov %s2591_s7 }
 0x183   : > { %s2589_s27 = smov %s2595_s8  ;;  %19 = sbr.rel (!%p17_p1) target bundleno = 5 (0x5), region = 133 }
 0x188   :  { %1346 = vsyncpa [#allocation4], 1 }
 0x189   :  { %1348 = vsyncpa [#allocation4 + $0x1], 1 }

</bundles_post_ra>
